<compile_context>
chip_gen: v7x
topology: tpu7x:2x2x1
jax: 0.10.0
libtpu: 0.0.40
codegen_flags: <defaults>
</compile_context>

<pallas_src>
import jax
import jax.numpy as jnp
from jax.experimental import pallas as pl
from jax.experimental.pallas import tpu as pltpu


def _make_resnet_block_kernel(H, W, Cout, M, neg_slope=0.01, eps=1e-5):
    """Builds the fused conv3x3 + BN(train) + LeakyReLU + residual kernel."""

    def kernel(x_ref, w_ref, mask_ref, gamma_ref, beta_ref, o_ref):
        # x_ref    : (Cin, M)       f32  channel-major lane-dense input slab
        #                                (also provides the residual)
        # w_ref    : (9, Cout, Cin) bf16 conv weights, tap-major (kh, kw)
        # mask_ref : (9, 1, M)      f32  1.0 where tap (kh, kw) stays inside
        #                                the image, 0.0 on the 'same' border
        # gamma_ref: (Cout, 1)      f32  BN weight (sublane vector)
        # beta_ref : (Cout, 1)      f32  BN bias
        # o_ref    : (Cout, M)      f32  lane-dense output slab
        x = x_ref[...]                       # f32; reused as the residual

        # ---- conv3x3 'same': 9 accumulating per-tap MXU matmuls -----------
        acc = jnp.zeros((Cout, M), jnp.float32)
        for kh in range(3):
            for kw in range(3):
                t = kh * 3 + kw
                shift = (kh - 1) * W + (kw - 1)
                if shift == 0:
                    tap = x                              # center tap == x
                else:
                    # Lane-roll brings x[:, m+shift] to position m; the
                    # precomputed mask zeroes positions whose source crosses
                    # an image border (implicit 'same' zero padding).
                    tap = jnp.roll(x, -shift, axis=1) * mask_ref[t]
                acc = acc + jnp.dot(
                    w_ref[t], tap.astype(jnp.bfloat16),
                    preferred_element_type=jnp.float32)
        # NOTE: conv bias intentionally omitted -- training-mode BN cancels it.

        # ---- BatchNorm2d (training mode), channel-major, two-pass var -----
        inv_m = jnp.float32(1.0 / M)
        mean = jnp.sum(acc, axis=1, keepdims=True) * inv_m        # (Cout, 1)
        centered = acc - mean
        var = jnp.sum(centered * centered, axis=1, keepdims=True) * inv_m
        y = centered * jax.lax.rsqrt(var + eps)
        y = y * gamma_ref[...] + beta_ref[...]

        # ---- LeakyReLU(0.01) + residual, lane-dense store ------------------
        y = jnp.where(y > 0, y, neg_slope * y)
        o_ref[...] = (y + x).astype(o_ref.dtype)

    return kernel


def resnet_block(x_nchw, w_oihw, bias, gamma, beta):
    """x_nchw: (B, C, H, W) float32. Returns (B, C, H, W) float32."""
    B, Cin, H, W = x_nchw.shape
    Cout, Cin_w, KH, KW = w_oihw.shape
    assert Cin_w == Cin and KH == 3 and KW == 3
    assert Cout == Cin, "residual add requires in_channels == out_channels"
    M = B * H * W

    # NCHW -> channel-major lane-dense slab (Cin, B*H*W).  Only layout
    # plumbing happens in the wrapper; 'same' padding (masking), conv, BN,
    # activation and residual all happen in-kernel.
    x_cm = jnp.transpose(x_nchw, (1, 0, 2, 3)).reshape(Cin, M)

    # OIHW -> (9, Cout, Cin) bf16, tap-major (kh, kw): one MXU weight block
    # per tap; f32 accumulation happens in the kernel.
    w9 = (jnp.transpose(w_oihw, (2, 3, 0, 1))
          .reshape(9, Cout, Cin).astype(jnp.bfloat16))

    # Per-tap border masks for 'same' padding (tiny constants: 9*M floats).
    pos = jnp.arange(M, dtype=jnp.int32)
    h_idx = (pos // W) % H
    w_idx = pos % W
    masks = []
    for kh in range(3):
        for kw in range(3):
            dh, dw = kh - 1, kw - 1
            ok = ((h_idx + dh >= 0) & (h_idx + dh < H) &
                  (w_idx + dw >= 0) & (w_idx + dw < W))
            masks.append(ok)
    tap_masks = jnp.stack(masks).astype(jnp.float32).reshape(9, 1, M)

    # Conv bias is NOT passed to the kernel: training-mode BatchNorm subtracts
    # the per-channel batch mean immediately after the conv, cancelling a
    # per-channel bias exactly.  (Reinstate it for eval-mode / running stats.)
    del bias

    vmem = pl.BlockSpec(memory_space=pltpu.MemorySpace.VMEM)
    kernel = _make_resnet_block_kernel(H, W, Cout, M)
    out_cm = pl.pallas_call(
        kernel,
        out_shape=jax.ShapeDtypeStruct((Cout, M), jnp.float32),
        in_specs=[vmem, vmem, vmem, vmem, vmem],
        out_specs=vmem,
        compiler_params=pltpu.CompilerParams(
            vmem_limit_bytes=32 * 1024 * 1024),
    )(x_cm, w9, tap_masks,
      gamma.reshape(Cout, 1).astype(jnp.float32),
      beta.reshape(Cout, 1).astype(jnp.float32))

    # (Cout, B*H*W) channel-major slab -> NCHW
    return jnp.transpose(out_cm.reshape(Cout, B, H, W), (1, 0, 2, 3))


def _reference(x_nchw, w_oihw, bias, gamma, beta):
    """Pure-JAX reference matching the PyTorch forward (training-mode BN)."""
    y = jax.lax.conv_general_dilated(
        x_nchw, w_oihw, window_strides=(1, 1), padding=((1, 1), (1, 1)),
        dimension_numbers=("NCHW", "OIHW", "NCHW"))
    y = y + bias[None, :, None, None]
    mean = jnp.mean(y, axis=(0, 2, 3), keepdims=True)
    var = jnp.mean((y - mean) ** 2, axis=(0, 2, 3), keepdims=True)
    y = (y - mean) * jax.lax.rsqrt(var + 1e-5)
    y = y * gamma[None, :, None, None] + beta[None, :, None, None]
    y = jnp.where(y > 0, y, 0.01 * y)
    return y + x_nchw


if __name__ == "__main__":
    key = jax.random.PRNGKey(0)
    kx, kw, kb, kg, kbt = jax.random.split(key, 5)

    # small shapes consistent with the module (in_channels == out_channels
    # required by the residual add)
    B, C, H, W = 2, 4, 16, 16
    K = 3

    x = jax.random.normal(kx, (B, C, H, W), dtype=jnp.float32)

    # deterministic parameter init (Conv2d weight/bias ~ U(-bound, bound);
    # BN affine params perturbed around their gamma=1 / beta=0 init)
    fan_in = C * K * K
    bound = 1.0 / jnp.sqrt(fan_in)
    w = jax.random.uniform(kw, (C, C, K, K), jnp.float32, -bound, bound)
    b = jax.random.uniform(kb, (C,), jnp.float32, -bound, bound)
    gamma = 1.0 + 0.1 * jax.random.normal(kg, (C,), dtype=jnp.float32)
    beta = 0.1 * jax.random.normal(kbt, (C,), dtype=jnp.float32)

    out = resnet_block(x, w, b, gamma, beta)
    jax.block_until_ready(out)

    ref = _reference(x, w, b, gamma, beta)
    assert out.shape == (B, C, H, W)
    # bf16 matmul inputs (f32 accumulation) -> slightly loosened tolerance.
    assert jnp.allclose(out, ref, atol=5e-2, rtol=5e-2), "mismatch vs reference"

    print("KERNEL_OK")
</pallas_src>

<mosaic_0001>
module attributes {stable_mosaic.version = 11 : i64} {
  func.func @kernel(%arg0: memref<4x512xf32, #tpu.memory_space<vmem>>, %arg1: memref<9x4x4xbf16, #tpu.memory_space<vmem>>, %arg2: memref<9x1x512xf32, #tpu.memory_space<vmem>>, %arg3: memref<4x1xf32, #tpu.memory_space<vmem>>, %arg4: memref<4x1xf32, #tpu.memory_space<vmem>>, %arg5: memref<4x512xf32, #tpu.memory_space<vmem>>) attributes {dimension_semantics = [], scalar_prefetch = 0 : i64, scratch_operands = 0 : i64, tpu.core_type = #tpu.core_type<tc>} {
    %c0 = arith.constant 0 : index
    %c0_0 = arith.constant 0 : index
    %0 = vector.load %arg0[%c0, %c0_0] : memref<4x512xf32, #tpu.memory_space<vmem>>, vector<4x512xf32>
    %cst = arith.constant 0.000000e+00 : f32
    %1 = vector.broadcast %cst : f32 to vector<4x512xf32>
    %2 = vector.extract_strided_slice %0 {offsets = [0, 495], sizes = [4, 17], strides = [1, 1]} : vector<4x512xf32> to vector<4x17xf32>
    %3 = vector.extract_strided_slice %0 {offsets = [0, 0], sizes = [4, 495], strides = [1, 1]} : vector<4x512xf32> to vector<4x495xf32>
    %4 = tpu.concatenate %2, %3 in 1 : vector<4x17xf32>, vector<4x495xf32> -> vector<4x512xf32>
    %c0_1 = arith.constant 0 : index
    %c0_2 = arith.constant 0 : index
    %c0_3 = arith.constant 0 : index
    %5 = vector.load %arg2[%c0_1, %c0_2, %c0_3] : memref<9x1x512xf32, #tpu.memory_space<vmem>>, vector<1x1x512xf32>
    %6 = vector.shape_cast %5 : vector<1x1x512xf32> to vector<1x512xf32>
    %7 = vector.broadcast %6 : vector<1x512xf32> to vector<4x512xf32>
    %8 = arith.mulf %4, %7 : vector<4x512xf32>
    %c0_4 = arith.constant 0 : index
    %c0_5 = arith.constant 0 : index
    %c0_6 = arith.constant 0 : index
    %9 = vector.load %arg1[%c0_4, %c0_5, %c0_6] : memref<9x4x4xbf16, #tpu.memory_space<vmem>>, vector<1x4x4xbf16>
    %10 = vector.shape_cast %9 : vector<1x4x4xbf16> to vector<4x4xbf16>
    %11 = arith.truncf %8 : vector<4x512xf32> to vector<4x512xbf16>
    %cst_7 = arith.constant dense<0.000000e+00> : vector<4x512xf32>
    %12 = tpu.matmul %10, %11, %cst_7 {dimension_numbers = #tpu.dot_dimension_numbers<[1], [0], [0], [1], [0, 0, 1, 1], [], []>} : vector<4x4xbf16>, vector<4x512xbf16>, vector<4x512xf32> -> vector<4x512xf32>
    %13 = arith.addf %1, %12 : vector<4x512xf32>
    %14 = vector.extract_strided_slice %0 {offsets = [0, 496], sizes = [4, 16], strides = [1, 1]} : vector<4x512xf32> to vector<4x16xf32>
    %15 = vector.extract_strided_slice %0 {offsets = [0, 0], sizes = [4, 496], strides = [1, 1]} : vector<4x512xf32> to vector<4x496xf32>
    %16 = tpu.concatenate %14, %15 in 1 : vector<4x16xf32>, vector<4x496xf32> -> vector<4x512xf32>
    %c1 = arith.constant 1 : index
    %c0_8 = arith.constant 0 : index
    %c0_9 = arith.constant 0 : index
    %17 = vector.load %arg2[%c1, %c0_8, %c0_9] : memref<9x1x512xf32, #tpu.memory_space<vmem>>, vector<1x1x512xf32>
    %18 = vector.shape_cast %17 : vector<1x1x512xf32> to vector<1x512xf32>
    %19 = vector.broadcast %18 : vector<1x512xf32> to vector<4x512xf32>
    %20 = arith.mulf %16, %19 : vector<4x512xf32>
    %c1_10 = arith.constant 1 : index
    %c0_11 = arith.constant 0 : index
    %c0_12 = arith.constant 0 : index
    %21 = vector.load %arg1[%c1_10, %c0_11, %c0_12] : memref<9x4x4xbf16, #tpu.memory_space<vmem>>, vector<1x4x4xbf16>
    %22 = vector.shape_cast %21 : vector<1x4x4xbf16> to vector<4x4xbf16>
    %23 = arith.truncf %20 : vector<4x512xf32> to vector<4x512xbf16>
    %cst_13 = arith.constant dense<0.000000e+00> : vector<4x512xf32>
    %24 = tpu.matmul %22, %23, %cst_13 {dimension_numbers = #tpu.dot_dimension_numbers<[1], [0], [0], [1], [0, 0, 1, 1], [], []>} : vector<4x4xbf16>, vector<4x512xbf16>, vector<4x512xf32> -> vector<4x512xf32>
    %25 = arith.addf %13, %24 : vector<4x512xf32>
    %26 = vector.extract_strided_slice %0 {offsets = [0, 497], sizes = [4, 15], strides = [1, 1]} : vector<4x512xf32> to vector<4x15xf32>
    %27 = vector.extract_strided_slice %0 {offsets = [0, 0], sizes = [4, 497], strides = [1, 1]} : vector<4x512xf32> to vector<4x497xf32>
    %28 = tpu.concatenate %26, %27 in 1 : vector<4x15xf32>, vector<4x497xf32> -> vector<4x512xf32>
    %c2 = arith.constant 2 : index
    %c0_14 = arith.constant 0 : index
    %c0_15 = arith.constant 0 : index
    %29 = vector.load %arg2[%c2, %c0_14, %c0_15] : memref<9x1x512xf32, #tpu.memory_space<vmem>>, vector<1x1x512xf32>
    %30 = vector.shape_cast %29 : vector<1x1x512xf32> to vector<1x512xf32>
    %31 = vector.broadcast %30 : vector<1x512xf32> to vector<4x512xf32>
    %32 = arith.mulf %28, %31 : vector<4x512xf32>
    %c2_16 = arith.constant 2 : index
    %c0_17 = arith.constant 0 : index
    %c0_18 = arith.constant 0 : index
    %33 = vector.load %arg1[%c2_16, %c0_17, %c0_18] : memref<9x4x4xbf16, #tpu.memory_space<vmem>>, vector<1x4x4xbf16>
    %34 = vector.shape_cast %33 : vector<1x4x4xbf16> to vector<4x4xbf16>
    %35 = arith.truncf %32 : vector<4x512xf32> to vector<4x512xbf16>
    %cst_19 = arith.constant dense<0.000000e+00> : vector<4x512xf32>
    %36 = tpu.matmul %34, %35, %cst_19 {dimension_numbers = #tpu.dot_dimension_numbers<[1], [0], [0], [1], [0, 0, 1, 1], [], []>} : vector<4x4xbf16>, vector<4x512xbf16>, vector<4x512xf32> -> vector<4x512xf32>
    %37 = arith.addf %25, %36 : vector<4x512xf32>
    %38 = vector.extract_strided_slice %0 {offsets = [0, 511], sizes = [4, 1], strides = [1, 1]} : vector<4x512xf32> to vector<4x1xf32>
    %39 = vector.extract_strided_slice %0 {offsets = [0, 0], sizes = [4, 511], strides = [1, 1]} : vector<4x512xf32> to vector<4x511xf32>
    %40 = tpu.concatenate %38, %39 in 1 : vector<4x1xf32>, vector<4x511xf32> -> vector<4x512xf32>
    %c3 = arith.constant 3 : index
    %c0_20 = arith.constant 0 : index
    %c0_21 = arith.constant 0 : index
    %41 = vector.load %arg2[%c3, %c0_20, %c0_21] : memref<9x1x512xf32, #tpu.memory_space<vmem>>, vector<1x1x512xf32>
    %42 = vector.shape_cast %41 : vector<1x1x512xf32> to vector<1x512xf32>
    %43 = vector.broadcast %42 : vector<1x512xf32> to vector<4x512xf32>
    %44 = arith.mulf %40, %43 : vector<4x512xf32>
    %c3_22 = arith.constant 3 : index
    %c0_23 = arith.constant 0 : index
    %c0_24 = arith.constant 0 : index
    %45 = vector.load %arg1[%c3_22, %c0_23, %c0_24] : memref<9x4x4xbf16, #tpu.memory_space<vmem>>, vector<1x4x4xbf16>
    %46 = vector.shape_cast %45 : vector<1x4x4xbf16> to vector<4x4xbf16>
    %47 = arith.truncf %44 : vector<4x512xf32> to vector<4x512xbf16>
    %cst_25 = arith.constant dense<0.000000e+00> : vector<4x512xf32>
    %48 = tpu.matmul %46, %47, %cst_25 {dimension_numbers = #tpu.dot_dimension_numbers<[1], [0], [0], [1], [0, 0, 1, 1], [], []>} : vector<4x4xbf16>, vector<4x512xbf16>, vector<4x512xf32> -> vector<4x512xf32>
    %49 = arith.addf %37, %48 : vector<4x512xf32>
    %c4 = arith.constant 4 : index
    %c0_26 = arith.constant 0 : index
    %c0_27 = arith.constant 0 : index
    %50 = vector.load %arg1[%c4, %c0_26, %c0_27] : memref<9x4x4xbf16, #tpu.memory_space<vmem>>, vector<1x4x4xbf16>
    %51 = vector.shape_cast %50 : vector<1x4x4xbf16> to vector<4x4xbf16>
    %52 = arith.truncf %0 : vector<4x512xf32> to vector<4x512xbf16>
    %cst_28 = arith.constant dense<0.000000e+00> : vector<4x512xf32>
    %53 = tpu.matmul %51, %52, %cst_28 {dimension_numbers = #tpu.dot_dimension_numbers<[1], [0], [0], [1], [0, 0, 1, 1], [], []>} : vector<4x4xbf16>, vector<4x512xbf16>, vector<4x512xf32> -> vector<4x512xf32>
    %54 = arith.addf %49, %53 : vector<4x512xf32>
    %55 = vector.extract_strided_slice %0 {offsets = [0, 1], sizes = [4, 511], strides = [1, 1]} : vector<4x512xf32> to vector<4x511xf32>
    %56 = vector.extract_strided_slice %0 {offsets = [0, 0], sizes = [4, 1], strides = [1, 1]} : vector<4x512xf32> to vector<4x1xf32>
    %57 = tpu.concatenate %55, %56 in 1 : vector<4x511xf32>, vector<4x1xf32> -> vector<4x512xf32>
    %c5 = arith.constant 5 : index
    %c0_29 = arith.constant 0 : index
    %c0_30 = arith.constant 0 : index
    %58 = vector.load %arg2[%c5, %c0_29, %c0_30] : memref<9x1x512xf32, #tpu.memory_space<vmem>>, vector<1x1x512xf32>
    %59 = vector.shape_cast %58 : vector<1x1x512xf32> to vector<1x512xf32>
    %60 = vector.broadcast %59 : vector<1x512xf32> to vector<4x512xf32>
    %61 = arith.mulf %57, %60 : vector<4x512xf32>
    %c5_31 = arith.constant 5 : index
    %c0_32 = arith.constant 0 : index
    %c0_33 = arith.constant 0 : index
    %62 = vector.load %arg1[%c5_31, %c0_32, %c0_33] : memref<9x4x4xbf16, #tpu.memory_space<vmem>>, vector<1x4x4xbf16>
    %63 = vector.shape_cast %62 : vector<1x4x4xbf16> to vector<4x4xbf16>
    %64 = arith.truncf %61 : vector<4x512xf32> to vector<4x512xbf16>
    %cst_34 = arith.constant dense<0.000000e+00> : vector<4x512xf32>
    %65 = tpu.matmul %63, %64, %cst_34 {dimension_numbers = #tpu.dot_dimension_numbers<[1], [0], [0], [1], [0, 0, 1, 1], [], []>} : vector<4x4xbf16>, vector<4x512xbf16>, vector<4x512xf32> -> vector<4x512xf32>
    %66 = arith.addf %54, %65 : vector<4x512xf32>
    %67 = vector.extract_strided_slice %0 {offsets = [0, 15], sizes = [4, 497], strides = [1, 1]} : vector<4x512xf32> to vector<4x497xf32>
    %68 = vector.extract_strided_slice %0 {offsets = [0, 0], sizes = [4, 15], strides = [1, 1]} : vector<4x512xf32> to vector<4x15xf32>
    %69 = tpu.concatenate %67, %68 in 1 : vector<4x497xf32>, vector<4x15xf32> -> vector<4x512xf32>
    %c6 = arith.constant 6 : index
    %c0_35 = arith.constant 0 : index
    %c0_36 = arith.constant 0 : index
    %70 = vector.load %arg2[%c6, %c0_35, %c0_36] : memref<9x1x512xf32, #tpu.memory_space<vmem>>, vector<1x1x512xf32>
    %71 = vector.shape_cast %70 : vector<1x1x512xf32> to vector<1x512xf32>
    %72 = vector.broadcast %71 : vector<1x512xf32> to vector<4x512xf32>
    %73 = arith.mulf %69, %72 : vector<4x512xf32>
    %c6_37 = arith.constant 6 : index
    %c0_38 = arith.constant 0 : index
    %c0_39 = arith.constant 0 : index
    %74 = vector.load %arg1[%c6_37, %c0_38, %c0_39] : memref<9x4x4xbf16, #tpu.memory_space<vmem>>, vector<1x4x4xbf16>
    %75 = vector.shape_cast %74 : vector<1x4x4xbf16> to vector<4x4xbf16>
    %76 = arith.truncf %73 : vector<4x512xf32> to vector<4x512xbf16>
    %cst_40 = arith.constant dense<0.000000e+00> : vector<4x512xf32>
    %77 = tpu.matmul %75, %76, %cst_40 {dimension_numbers = #tpu.dot_dimension_numbers<[1], [0], [0], [1], [0, 0, 1, 1], [], []>} : vector<4x4xbf16>, vector<4x512xbf16>, vector<4x512xf32> -> vector<4x512xf32>
    %78 = arith.addf %66, %77 : vector<4x512xf32>
    %79 = vector.extract_strided_slice %0 {offsets = [0, 16], sizes = [4, 496], strides = [1, 1]} : vector<4x512xf32> to vector<4x496xf32>
    %80 = vector.extract_strided_slice %0 {offsets = [0, 0], sizes = [4, 16], strides = [1, 1]} : vector<4x512xf32> to vector<4x16xf32>
    %81 = tpu.concatenate %79, %80 in 1 : vector<4x496xf32>, vector<4x16xf32> -> vector<4x512xf32>
    %c7 = arith.constant 7 : index
    %c0_41 = arith.constant 0 : index
    %c0_42 = arith.constant 0 : index
    %82 = vector.load %arg2[%c7, %c0_41, %c0_42] : memref<9x1x512xf32, #tpu.memory_space<vmem>>, vector<1x1x512xf32>
    %83 = vector.shape_cast %82 : vector<1x1x512xf32> to vector<1x512xf32>
    %84 = vector.broadcast %83 : vector<1x512xf32> to vector<4x512xf32>
    %85 = arith.mulf %81, %84 : vector<4x512xf32>
    %c7_43 = arith.constant 7 : index
    %c0_44 = arith.constant 0 : index
    %c0_45 = arith.constant 0 : index
    %86 = vector.load %arg1[%c7_43, %c0_44, %c0_45] : memref<9x4x4xbf16, #tpu.memory_space<vmem>>, vector<1x4x4xbf16>
    %87 = vector.shape_cast %86 : vector<1x4x4xbf16> to vector<4x4xbf16>
    %88 = arith.truncf %85 : vector<4x512xf32> to vector<4x512xbf16>
    %cst_46 = arith.constant dense<0.000000e+00> : vector<4x512xf32>
    %89 = tpu.matmul %87, %88, %cst_46 {dimension_numbers = #tpu.dot_dimension_numbers<[1], [0], [0], [1], [0, 0, 1, 1], [], []>} : vector<4x4xbf16>, vector<4x512xbf16>, vector<4x512xf32> -> vector<4x512xf32>
    %90 = arith.addf %78, %89 : vector<4x512xf32>
    %91 = vector.extract_strided_slice %0 {offsets = [0, 17], sizes = [4, 495], strides = [1, 1]} : vector<4x512xf32> to vector<4x495xf32>
    %92 = vector.extract_strided_slice %0 {offsets = [0, 0], sizes = [4, 17], strides = [1, 1]} : vector<4x512xf32> to vector<4x17xf32>
    %93 = tpu.concatenate %91, %92 in 1 : vector<4x495xf32>, vector<4x17xf32> -> vector<4x512xf32>
    %c8 = arith.constant 8 : index
    %c0_47 = arith.constant 0 : index
    %c0_48 = arith.constant 0 : index
    %94 = vector.load %arg2[%c8, %c0_47, %c0_48] : memref<9x1x512xf32, #tpu.memory_space<vmem>>, vector<1x1x512xf32>
    %95 = vector.shape_cast %94 : vector<1x1x512xf32> to vector<1x512xf32>
    %96 = vector.broadcast %95 : vector<1x512xf32> to vector<4x512xf32>
    %97 = arith.mulf %93, %96 : vector<4x512xf32>
    %c8_49 = arith.constant 8 : index
    %c0_50 = arith.constant 0 : index
    %c0_51 = arith.constant 0 : index
    %98 = vector.load %arg1[%c8_49, %c0_50, %c0_51] : memref<9x4x4xbf16, #tpu.memory_space<vmem>>, vector<1x4x4xbf16>
    %99 = vector.shape_cast %98 : vector<1x4x4xbf16> to vector<4x4xbf16>
    %100 = arith.truncf %97 : vector<4x512xf32> to vector<4x512xbf16>
    %cst_52 = arith.constant dense<0.000000e+00> : vector<4x512xf32>
    %101 = tpu.matmul %99, %100, %cst_52 {dimension_numbers = #tpu.dot_dimension_numbers<[1], [0], [0], [1], [0, 0, 1, 1], [], []>} : vector<4x4xbf16>, vector<4x512xbf16>, vector<4x512xf32> -> vector<4x512xf32>
    %102 = arith.addf %90, %101 : vector<4x512xf32>
    %cst_53 = arith.constant dense<0.000000e+00> : vector<4xf32>
    %103 = vector.multi_reduction <add>, %102, %cst_53 [1] : vector<4x512xf32> to vector<4xf32>
    %104 = vector.shape_cast %103 : vector<4xf32> to vector<4x1xf32>
    %cst_54 = arith.constant 0.001953125 : f32
    %105 = vector.broadcast %cst_54 : f32 to vector<4x1xf32>
    %106 = arith.mulf %104, %105 : vector<4x1xf32>
    %107 = vector.broadcast %106 : vector<4x1xf32> to vector<4x512xf32>
    %108 = arith.subf %102, %107 : vector<4x512xf32>
    %109 = arith.mulf %108, %108 : vector<4x512xf32>
    %cst_55 = arith.constant dense<0.000000e+00> : vector<4xf32>
    %110 = vector.multi_reduction <add>, %109, %cst_55 [1] : vector<4x512xf32> to vector<4xf32>
    %111 = vector.shape_cast %110 : vector<4xf32> to vector<4x1xf32>
    %cst_56 = arith.constant 0.001953125 : f32
    %112 = vector.broadcast %cst_56 : f32 to vector<4x1xf32>
    %113 = arith.mulf %111, %112 : vector<4x1xf32>
    %cst_57 = arith.constant 9.99999974E-6 : f32
    %114 = vector.broadcast %cst_57 : f32 to vector<4x1xf32>
    %115 = arith.addf %113, %114 : vector<4x1xf32>
    %116 = math.rsqrt %115 : vector<4x1xf32>
    %117 = vector.broadcast %116 : vector<4x1xf32> to vector<4x512xf32>
    %118 = arith.mulf %108, %117 : vector<4x512xf32>
    %c0_58 = arith.constant 0 : index
    %c0_59 = arith.constant 0 : index
    %119 = vector.load %arg3[%c0_58, %c0_59] : memref<4x1xf32, #tpu.memory_space<vmem>>, vector<4x1xf32>
    %120 = vector.broadcast %119 : vector<4x1xf32> to vector<4x512xf32>
    %121 = arith.mulf %118, %120 : vector<4x512xf32>
    %c0_60 = arith.constant 0 : index
    %c0_61 = arith.constant 0 : index
    %122 = vector.load %arg4[%c0_60, %c0_61] : memref<4x1xf32, #tpu.memory_space<vmem>>, vector<4x1xf32>
    %123 = vector.broadcast %122 : vector<4x1xf32> to vector<4x512xf32>
    %124 = arith.addf %121, %123 : vector<4x512xf32>
    %cst_62 = arith.constant 0.000000e+00 : f32
    %125 = vector.broadcast %cst_62 : f32 to vector<4x512xf32>
    %126 = arith.cmpf ogt, %124, %125 : vector<4x512xf32>
    %cst_63 = arith.constant 0.00999999977 : f32
    %127 = vector.broadcast %cst_63 : f32 to vector<4x512xf32>
    %128 = arith.mulf %127, %124 : vector<4x512xf32>
    %129 = arith.select %126, %124, %128 : vector<4x512xi1>, vector<4x512xf32>
    %130 = arith.addf %129, %0 : vector<4x512xf32>
    %c0_64 = arith.constant 0 : index
    %c0_65 = arith.constant 0 : index
    %131 = vector.load %arg5[%c0_64, %c0_65] : memref<4x512xf32, #tpu.memory_space<vmem>>, vector<4x512xf32>
    tpu.vector_store %arg5[%c0_64, %c0_65], %130 {strides = array<i32>} : memref<4x512xf32, #tpu.memory_space<vmem>>, vector<4x512xf32>,
    return
  }
}

</mosaic_0001>

<bundles_post_ra>
// kernel: tpu_custom_call.1
= control target key start
LH: loop header
LB: loop body
LE: loop exit
PB: predicated region body
PF: predicated region fallthrough
CT: control target
= control target key end

     0   :  { %10 = vsyncpa [#allocation3], 0  ;;  %s1961_s0 = inlined_call_operand.hbm [shape: f32[4,512], index: 0, kind: input, shape index: {}]   ;;  %s1962_s1 = inlined_call_operand.vmem [shape: bf16[9,4,4], index: 1, kind: input, shape index: {}]   ;;  %s1963_s2 = inlined_call_operand.vmem [shape: f32[9,1,512], index: 2, kind: input, shape index: {}]   ;;  %s1964_s3 = inlined_call_operand.vmem [shape: f32[4,1], index: 3, kind: input, shape index: {}]   ;;  %s1965_s4 = inlined_call_operand.vmem [shape: f32[4,1], index: 4, kind: input, shape index: {}]   ;;  %s1966_s5 = inlined_call_operand.hbm [shape: f32[4,512], index: 5, kind: output, shape index: {}]  }
   0x1   :  { %11 = vsyncpa [#allocation4], 0  ;;  %s1633_s18 = smov [#allocation2]   ;;  %s1585_s22 = scalar_lea.hbm %s1961_s0, 256 }
   0x2   :  { %s18_s19 = sshll.u32 %s1633_s18, 4  ;;  %p1586_p0 = scmp.ne.s32.totalorder %s1961_s0, %s1585_s22  ;;  %s19_s19 = int_to_ptr.vmem [resolvable:$true] %s18_s19 }
   0x3   :  { %p1589_p1 = scmp.lt.u32.totalorder %s1585_s22, %s1961_s0 }
   0x5   :  { %p1591_p2 = pnand %p1589_p1, %p1586_p0 }
   0x7   :  { %1594 = shalt.err (!%p1591_p2)
}
   0x8   :  { %s1595_s27 = scalar_lea.vmem %s19_s19, 256  ;;  %p1600_p4 = scmp.lt.s32.totalorder %s19_s19, %s19_s19 }
   0x9   :  { %p1596_p3 = scmp.ne.s32.totalorder %s19_s19, %s1595_s27  ;;  %p1601_p5 = scmp.lt.s32.totalorder %s1595_s27, %s1595_s27 }
   0xb   :  { %p1602_p6 = por %p1601_p5, %p1600_p4 }
   0xd   :  { %p1603_p7 = pnand %p1602_p6, %p1596_p3 }
   0xf   :  { %1606 = shalt.err (!%p1603_p7)
}
  0x10   :  { %21 = dma.hbm_to_vmem [thread:$0]  %s1961_s0, 256, %s19_s19, [#allocation3]  }
  0x11   :  { %1629 = dma.done.wait [#allocation3], 256  }
  0x12   :  { %1630 = vsyncadd [#allocation3], 4294967040  ;;  %v1686_v0 = vld [vmem:[#allocation2 + $0x8] sm:$0xff]  ;;  %v1688_v1 = vld [vmem:[#allocation2] sm:$0xff]  ;;  %s1634_s30 = smov 16   ;;  %v1635_v4 = vmov 0   ;;  %v60_v5 = vlaneseq }
  0x13   :  { %v1692_v2 = vcombine.high %v1686_v0, %v1686_v0  ;;  %v1696_v3 = vcombine.high %v1688_v1, %v1688_v1  ;;  %189 = vmatprep.mubr.bf16.mxu0 %v1635_v4  ;;  %230 = vmatprep.mubr.bf16.mxu1 %v1635_v4  ;;  %s1636_s0 = smov 17   ;;  %s1637_s6 = smov 15   ;;  %v1453_v11 = vld [vmem:[%s1963_s2 + $0x4] sm:$0xf]  ;;  %vm98_vm0 = vcmask 130048   ;;  %vm49_vm1 = vcmask 138240  }
  0x14   :  { %1579 = vset.pattern.permute.xlu0 %v1635_v4  ;;  %1580 = vset.pattern.permute.xlu1 %v1635_v4  ;;  %s1638_s7 = smov 1   ;;  %s1639_s8 = smov 127   ;;  %v61_v6 = vshrl.u32 %v60_v5, 7  ;;  %v58_v14 = vld [vmem:[%s1963_s2] sm:$0xf]  ;;  %vm144_vm2 = vcmask 1041408  }
  0x15   :  { %89 = vrot.lane.b32.xlu0 %v1692_v2, %s1634_s30  ;;  %94 = vrot.lane.b32.xlu1 %v1696_v3, %s1634_s30  ;;  %s1640_s9 = smov 113   ;;  %s1641_s10 = smov 112   ;;  %v1463_v43 = vld [vmem:[%s1963_s2 + $0x8] sm:$0xf]  ;;  %v1454_v44 = vld [vmem:[%s1962_s1 + $0x2] sm:$0x3] }
  0x16   :  { %s1642_s11 = smov 111   ;;  %v1734_v7 = vsub.s32 0, %v61_v6  ;;  %v1736_v8 = vsub.s32 2, %v61_v6  ;;  %v1738_v9 = vsub.s32 1, %v61_v6  ;;  %v1740_v10 = vsub.s32 3, %v61_v6 }
  0x17   :  { %vm140_vm3 = vcmask 31744   ;;  %vm345_vm4 = vcmask 121856   ;;  %vm497_vm5 = vcmask 7168   ;;  %vm757_vm6 = vcmask 1039360  }
  0x18   :  { %v113_v15 = vrot.slane %v1453_v11, %v1734_v7  ;;  %v121_v16 = vrot.slane %v1453_v11, %v1736_v8  ;;  %v117_v17 = vrot.slane %v1453_v11, %v1738_v9  ;;  %v125_v18 = vrot.slane %v1453_v11, %v1740_v10 }
  0x19   :  { %92 = vrot.lane.b32.xlu0 %v1688_v1, %s1634_s30  ;;  %96 = vrot.lane.b32.xlu1 %v1686_v0, %s1634_s30  ;;  %v63_v21 = vrot.slane %v58_v14, %v1734_v7  ;;  %v67_v37 = vrot.slane %v58_v14, %v1738_v9  ;;  %v75_v38 = vrot.slane %v58_v14, %v1740_v10  ;;  %vm909_vm7 = vcmask 924672  }
  0x1a   :  { %v71_v42 = vrot.slane %v58_v14, %v1736_v8  ;;  %v360_v51 = vrot.slane %v1463_v43, %v1734_v7  ;;  %v364_v62 = vrot.slane %v1463_v43, %v1738_v9  ;;  %v368_v6 = vrot.slane %v1463_v43, %v1736_v8 }
  0x1b   :  { %v372_v11 = vrot.slane %v1463_v43, %v1740_v10  ;;  %vm1061_vm8 = vcmask 916480   ;;  %vm1213_vm9 = vcmask 908288   ;;  %vm1357_vm10 = vcmask 1043456  }
  0x1d   :  { %38 = vrot.lane.b32.xlu0 %v1692_v2, %s1636_s0  ;;  %43 = vrot.lane.b32.xlu1 %v1688_v1, %s1636_s0 }
  0x21   :  { %45 = vrot.lane.b32.xlu0 %v1696_v3, %s1636_s0  ;;  %47 = vrot.lane.b32.xlu1 %v1686_v0, %s1636_s0 }
  0x25   :  { %336 = vrot.lane.b32.xlu0 %v1692_v2, %s1637_s6  ;;  %339 = vrot.lane.b32.xlu1 %v1688_v1, %s1637_s6 }
  0x29   :  { %341 = vrot.lane.b32.xlu0 %v1696_v3, %s1637_s6  ;;  %343 = vrot.lane.b32.xlu1 %v1686_v0, %s1637_s6 }
  0x2d   :  { %488 = vrot.lane.b32.xlu0 %v1692_v2, %s1638_s7  ;;  %491 = vrot.lane.b32.xlu1 %v1688_v1, %s1638_s7 }
  0x31   :  { %493 = vrot.lane.b32.xlu0 %v1696_v3, %s1638_s7  ;;  %495 = vrot.lane.b32.xlu1 %v1686_v0, %s1638_s7 }
  0x35   :  { %749 = vrot.lane.b32.xlu0 %v1688_v1, %s1639_s8  ;;  %751 = vrot.lane.b32.xlu1 %v1696_v3, %s1639_s8 }
  0x39   :  { %753 = vrot.lane.b32.xlu0 %v1686_v0, %s1639_s8  ;;  %755 = vrot.lane.b32.xlu1 %v1692_v2, %s1639_s8 }
  0x3d   :  { %901 = vrot.lane.b32.xlu0 %v1688_v1, %s1640_s9  ;;  %903 = vrot.lane.b32.xlu1 %v1696_v3, %s1640_s9 }
  0x41   :  { %905 = vrot.lane.b32.xlu0 %v1686_v0, %s1640_s9  ;;  %907 = vrot.lane.b32.xlu1 %v1692_v2, %s1640_s9 }
  0x45   :  { %1053 = vrot.lane.b32.xlu0 %v1688_v1, %s1641_s10  ;;  %1055 = vrot.lane.b32.xlu1 %v1696_v3, %s1641_s10 }
  0x49   :  { %1057 = vrot.lane.b32.xlu0 %v1686_v0, %s1641_s10  ;;  %1059 = vrot.lane.b32.xlu1 %v1692_v2, %s1641_s10 }
  0x4d   :  { %1205 = vrot.lane.b32.xlu0 %v1688_v1, %s1642_s11  ;;  %1207 = vrot.lane.b32.xlu1 %v1696_v3, %s1642_s11 }
  0x51   :  { %1209 = vrot.lane.b32.xlu0 %v1686_v0, %s1642_s11  ;;  %1211 = vrot.lane.b32.xlu1 %v1692_v2, %s1642_s11 }
  0x87   :  { %v90_v12 = vpop.permute.xlu0 %89  ;;  %v95_v13 = vpop.permute.xlu1 %94 }
  0x8b   :  { %v93_v19 = vpop.permute.xlu0 %92  ;;  %v97_v20 = vpop.permute.xlu1 %96 }
  0x8c   :  { %v99_v22 = vsel %vm98_vm0, %v93_v19, %v95_v13  ;;  %v106_v23 = vsel %vm98_vm0, %v90_v12, %v93_v19  ;;  %v100_v24 = vsel %vm98_vm0, %v95_v13, %v97_v20  ;;  %v101_v25 = vsel %vm98_vm0, %v97_v20, %v90_v12 }
  0x8d   :  { %v130_v26 = vmul.f32 %v113_v15, %v106_v23  ;;  %v132_v27 = vmul.f32 %v121_v16, %v100_v24  ;;  %v131_v28 = vmul.f32 %v117_v17, %v99_v22  ;;  %v133_v29 = vmul.f32 %v125_v18, %v101_v25  ;;  %v1469_v18 = vld [vmem:[%s1963_s2 + $0xc] sm:$0xf]  ;;  %v84_v22 = vld [vmem:[%s1962_s1] sm:$0x3] }
  0x8f   :  { %v39_v30 = vpop.permute.xlu0 %38  ;;  %v44_v31 = vpop.permute.xlu1 %43  ;;  %v137_v32 = vpack.c.bf16 %v131_v28, %v131_v28  ;;  %v139_v33 = vpack.c.bf16 %v133_v29, %v133_v29  ;;  %v136_v34 = vpack.c.bf16 %v130_v26, %v130_v26  ;;  %v138_v35 = vpack.c.bf16 %v132_v27, %v132_v27 }
  0x90   :  { %v57_v36 = vsel %vm49_vm1, %v39_v30, %v44_v31  ;;  %v512_v27 = vrot.slane %v1469_v18, %v1734_v7 }
  0x91   :  { %v80_v39 = vmul.f32 %v63_v21, %v57_v36  ;;  %1455 = vmatprep.subr.msk.bf16.mxu0 %vm144_vm2, %v137_v32  ;;  %1457 = vmatprep.subr.msk.bf16.mxu1 %vm144_vm2, %v139_v33  ;;  %v146_v40 = vsel %vm144_vm2, %v136_v34, 0  ;;  %v152_v41 = vsel %vm144_vm2, %v138_v35, 0  ;;  %v516_v32 = vrot.slane %v1469_v18, %v1738_v9 }
  0x92   :  { %158 = vmatpush1.bf16.msra.mxu0 %v146_v40  ;;  %199 = vmatpush1.bf16.msra.mxu1 %v152_v41  ;;  %v520_v33 = vrot.slane %v1469_v18, %v1736_v8  ;;  %v524_v34 = vrot.slane %v1469_v18, %v1740_v10 }
  0x93   :  { %v85_v45 = vpack.c.bf16 %v80_v39, %v80_v39  ;;  %v46_v46 = vpop.permute.xlu0 %45  ;;  %v48_v47 = vpop.permute.xlu1 %47 }
  0x94   :  { %v50_v48 = vsel %vm49_vm1, %v44_v31, %v46_v46  ;;  %v51_v49 = vsel %vm49_vm1, %v46_v46, %v48_v47  ;;  %v52_v50 = vsel %vm49_vm1, %v48_v47, %v39_v30 }
  0x95   :  { %v81_v52 = vmul.f32 %v67_v37, %v50_v48  ;;  %v82_v53 = vmul.f32 %v71_v42, %v51_v49  ;;  %v83_v54 = vmul.f32 %v75_v38, %v52_v50  ;;  %1456 = vmatmul.mubr.msk.bf16.vlgmr.msra.gmra.mrb[0].mxu0 %vm140_vm3, %v1454_v44  ;;  %1458 = vmatmul.mubr.msk.bf16.vlgmr.msra.gmra.mrb[0].mxu1 %vm140_vm3, %v1454_v44  ;;  %v243_v60 = vsel %vm144_vm2, %v85_v45, 0  ;;  %v1464_v50 = vld [vmem:[%s1962_s1 + $0x4] sm:$0x3] }
  0x96   :  { %286 = vmatprep.mubr.bf16.mxu0 %v1635_v4  ;;  %327 = vmatprep.mubr.bf16.mxu1 %v1635_v4 }
  0x97   :  { %v86_v55 = vpack.c.bf16 %v81_v52, %v81_v52  ;;  %v87_v56 = vpack.c.bf16 %v82_v53, %v82_v53  ;;  %v88_v57 = vpack.c.bf16 %v83_v54, %v83_v54  ;;  %v337_v58 = vpop.permute.xlu0 %336  ;;  %v340_v59 = vpop.permute.xlu1 %339  ;;  %v645_v53 = vpack.c.bf16 %v1696_v3, %v1696_v3 }
  0x98   :  { %v353_v61 = vsel %vm345_vm4, %v337_v58, %v340_v59  ;;  %v647_v54 = vpack.c.bf16 %v1692_v2, %v1692_v2 }
  0x99   :  { %v377_v63 = vmul.f32 %v360_v51, %v353_v61  ;;  %1459 = vmatprep.subr.msk.bf16.mxu0 %vm144_vm2, %v86_v55  ;;  %1461 = vmatprep.subr.msk.bf16.mxu1 %vm144_vm2, %v88_v57  ;;  %v249_v5 = vsel %vm144_vm2, %v87_v56, 0  ;;  %v1480_v55 = vld [vmem:[%s1963_s2 + $0x14] sm:$0xf] }
  0x9a   :  { %255 = vmatpush1.bf16.msra.mxu0 %v243_v60  ;;  %296 = vmatpush1.bf16.msra.mxu1 %v249_v5 }
  0x9b   :  { %v342_v12 = vpop.permute.xlu0 %341  ;;  %v344_v13 = vpop.permute.xlu1 %343  ;;  %v383_v14 = vpack.c.bf16 %v377_v63, %v377_v63  ;;  %v646_v63 = vpack.c.bf16 %v1686_v0, %v1686_v0 }
  0x9c   :  { %v346_v15 = vsel %vm345_vm4, %v340_v59, %v342_v12  ;;  %v347_v16 = vsel %vm345_vm4, %v342_v12, %v344_v13  ;;  %v348_v17 = vsel %vm345_vm4, %v344_v13, %v337_v58  ;;  %v777_v58 = vrot.slane %v1480_v55, %v1738_v9  ;;  %v1470_v13 = vld [vmem:[%s1962_s1 + $0x6] sm:$0x3] }
  0x9d   :  { %v378_v19 = vmul.f32 %v364_v62, %v346_v15  ;;  %v379_v20 = vmul.f32 %v368_v6, %v347_v16  ;;  %v380_v21 = vmul.f32 %v372_v11, %v348_v17  ;;  %v391_v29 = vsel %vm144_vm2, %v383_v14, 0 }
  0x9e   :  { %v785_v59 = vrot.slane %v1480_v55, %v1740_v10  ;;  %v644_v62 = vpack.c.bf16 %v1688_v1, %v1688_v1  ;;  %v773_v14 = vrot.slane %v1480_v55, %v1734_v7  ;;  %v781_v16 = vrot.slane %v1480_v55, %v1736_v8 }
  0x9f   :  { %v384_v23 = vpack.c.bf16 %v378_v19, %v378_v19  ;;  %v385_v24 = vpack.c.bf16 %v379_v20, %v379_v20  ;;  %v386_v25 = vpack.c.bf16 %v380_v21, %v380_v21  ;;  %v489_v26 = vpop.permute.xlu0 %488  ;;  %v492_v28 = vpop.permute.xlu1 %491  ;;  %v658_v17 = vsel %vm144_vm2, %v646_v63, 0 }
  0xa0   :  { %v505_v30 = vsel %vm497_vm5, %v489_v26, %v492_v28  ;;  %v652_v15 = vsel %vm144_vm2, %v644_v62, 0 }
  0xa1   :  { %1460 = vmatmul.mubr.msk.bf16.vlgmr.msra.gmra.mrb[0].mxu0 %vm140_vm3, %v84_v22  ;;  %1462 = vmatmul.mubr.msk.bf16.vlgmr.msra.gmra.mrb[0].mxu1 %vm140_vm3, %v84_v22  ;;  %v397_v31 = vsel %vm144_vm2, %v385_v24, 0  ;;  %v529_v35 = vmul.f32 %v512_v27, %v505_v30  ;;  %v1486_v22 = vld [vmem:[%s1963_s2 + $0x18] sm:$0xf] }
  0xa2   :  { %1465 = vmatprep.subr.msk.bf16.mxu0 %vm144_vm2, %v384_v23  ;;  %1467 = vmatprep.subr.msk.bf16.mxu1 %vm144_vm2, %v386_v25  ;;  %v929_v27 = vrot.slane %v1486_v22, %v1738_v9 }
  0xa3   :  { %403 = vmatpush1.bf16.msra.mxu0 %v391_v29  ;;  %444 = vmatpush1.bf16.msra.mxu1 %v397_v31  ;;  %v494_v36 = vpop.permute.xlu0 %493  ;;  %v496_v37 = vpop.permute.xlu1 %495  ;;  %v535_v44 = vpack.c.bf16 %v529_v35, %v529_v35 }
  0xa4   :  { %v498_v38 = vsel %vm497_vm5, %v492_v28, %v494_v36  ;;  %v499_v39 = vsel %vm497_vm5, %v494_v36, %v496_v37  ;;  %v500_v40 = vsel %vm497_vm5, %v496_v37, %v489_v26  ;;  %434 = vmatprep.mubr.bf16.mxu0 %v1635_v4  ;;  %475 = vmatprep.mubr.bf16.mxu1 %v1635_v4  ;;  %v1475_v37 = vld [vmem:[%s1962_s1 + $0x8] sm:$0x3] }
  0xa5   :  { %v530_v41 = vmul.f32 %v516_v32, %v498_v38  ;;  %v531_v42 = vmul.f32 %v520_v33, %v499_v39  ;;  %v532_v43 = vmul.f32 %v524_v34, %v500_v40  ;;  %v543_v51 = vsel %vm144_vm2, %v535_v44, 0 }
  0xa6   :  { %v937_v28 = vrot.slane %v1486_v22, %v1740_v10  ;;  %v925_v39 = vrot.slane %v1486_v22, %v1734_v7 }
  0xa7   :  { %v536_v45 = vpack.c.bf16 %v530_v41, %v530_v41  ;;  %v537_v46 = vpack.c.bf16 %v531_v42, %v531_v42  ;;  %v538_v47 = vpack.c.bf16 %v532_v43, %v532_v43  ;;  %v750_v48 = vpop.permute.xlu0 %749  ;;  %v752_v49 = vpop.permute.xlu1 %751  ;;  %v933_v41 = vrot.slane %v1486_v22, %v1736_v8 }
  0xa8   :  { %v758_v18 = vsel %vm757_vm6, %v750_v48, %v752_v49 }
  0xa9   :  { %1471 = vmatprep.subr.msk.bf16.mxu0 %vm144_vm2, %v536_v45  ;;  %1473 = vmatprep.subr.msk.bf16.mxu1 %vm144_vm2, %v538_v47  ;;  %v549_v52 = vsel %vm144_vm2, %v537_v46, 0  ;;  %v790_v25 = vmul.f32 %v773_v14, %v758_v18  ;;  %v1492_v46 = vld [vmem:[%s1963_s2 + $0x1c] sm:$0xf] }
  0xaa   :  { %v1077_v63 = vrot.slane %v1492_v46, %v1734_v7 }
  0xab   :  { %v754_v56 = vpop.permute.xlu0 %753  ;;  %v756_v57 = vpop.permute.xlu1 %755  ;;  %v796_v31 = vpack.c.bf16 %v790_v25, %v790_v25 }
  0xac   :  { %v759_v60 = vsel %vm757_vm6, %v752_v49, %v754_v56  ;;  %v766_v61 = vsel %vm757_vm6, %v756_v57, %v750_v48  ;;  %v760_v20 = vsel %vm757_vm6, %v754_v56, %v756_v57 }
  0xad   :  { %1466 = vmatmul.mubr.msk.bf16.vlgmr.msra.gmra.mrb[0].mxu0 %vm140_vm3, %v1464_v50  ;;  %1468 = vmatmul.mubr.msk.bf16.vlgmr.msra.gmra.mrb[0].mxu1 %vm140_vm3, %v1464_v50  ;;  %v791_v5 = vmul.f32 %v777_v58, %v759_v60  ;;  %v793_v6 = vmul.f32 %v785_v59, %v766_v61  ;;  %v792_v26 = vmul.f32 %v781_v16, %v760_v20  ;;  %v804_v38 = vsel %vm144_vm2, %v796_v31, 0  ;;  %v1481_v61 = vld [vmem:[%s1962_s1 + $0xa] sm:$0x3] }
  0xae   :  { %555 = vmatpush1.bf16.msra.mxu0 %v543_v51  ;;  %596 = vmatpush1.bf16.msra.mxu1 %v549_v52  ;;  %v1081_v51 = vrot.slane %v1492_v46, %v1738_v9  ;;  %v1089_v52 = vrot.slane %v1492_v46, %v1740_v10 }
  0xaf   :  { %586 = vmatprep.mubr.bf16.mxu0 %v1635_v4  ;;  %627 = vmatprep.mubr.bf16.mxu1 %v1635_v4  ;;  %v902_v11 = vpop.permute.xlu0 %901  ;;  %v904_v12 = vpop.permute.xlu1 %903  ;;  %v797_v19 = vpack.c.bf16 %v791_v5, %v791_v5  ;;  %v799_v21 = vpack.c.bf16 %v793_v6, %v793_v6  ;;  %v798_v32 = vpack.c.bf16 %v792_v26, %v792_v26 }
  0xb0   :  { %1476 = vmatprep.subr.msk.bf16.mxu0 %vm144_vm2, %v645_v53  ;;  %1478 = vmatprep.subr.msk.bf16.mxu1 %vm144_vm2, %v647_v54  ;;  %v910_v42 = vsel %vm909_vm7, %v902_v11, %v904_v12  ;;  %v1085_v6 = vrot.slane %v1492_v46, %v1736_v8 }
  0xb1   :  { %v810_v40 = vsel %vm144_vm2, %v798_v32, 0  ;;  %v942_v49 = vmul.f32 %v925_v39, %v910_v42 }
  0xb3   :  { %v906_v23 = vpop.permute.xlu0 %905  ;;  %v908_v24 = vpop.permute.xlu1 %907  ;;  %v948_v55 = vpack.c.bf16 %v942_v49, %v942_v49 }
  0xb4   :  { %v911_v29 = vsel %vm909_vm7, %v904_v12, %v906_v23  ;;  %v918_v30 = vsel %vm909_vm7, %v908_v24, %v902_v11  ;;  %v912_v44 = vsel %vm909_vm7, %v906_v23, %v908_v24 }
  0xb5   :  { %v943_v33 = vmul.f32 %v929_v27, %v911_v29  ;;  %v945_v34 = vmul.f32 %v937_v28, %v918_v30  ;;  %v944_v50 = vmul.f32 %v933_v41, %v912_v44  ;;  %v956_v62 = vsel %vm144_vm2, %v948_v55, 0  ;;  %v1487_v28 = vld [vmem:[%s1962_s1 + $0xc] sm:$0x3]  ;;  %v1392_v55 = vld [vmem:[%s1964_s3] sm:$0xf] }
  0xb7   :  { %v1054_v35 = vpop.permute.xlu0 %1053  ;;  %v1056_v36 = vpop.permute.xlu1 %1055  ;;  %v949_v43 = vpack.c.bf16 %v943_v33, %v943_v33  ;;  %v951_v45 = vpack.c.bf16 %v945_v34, %v945_v34  ;;  %v950_v56 = vpack.c.bf16 %v944_v50, %v944_v50 }
  0xb8   :  { %v1062_v11 = vsel %vm1061_vm8, %v1054_v35, %v1056_v36 }
  0xb9   :  { %1472 = vmatmul.mubr.msk.bf16.vlgmr.msra.gmra.mrb[0].mxu0 %vm140_vm3, %v1470_v13  ;;  %1474 = vmatmul.mubr.msk.bf16.vlgmr.msra.gmra.mrb[0].mxu1 %vm140_vm3, %v1470_v13  ;;  %v962_v5 = vsel %vm144_vm2, %v950_v56, 0  ;;  %v1094_v18 = vmul.f32 %v1077_v63, %v1062_v11 }
  0xba   :  { %664 = vmatpush1.bf16.msra.mxu0 %v652_v15  ;;  %705 = vmatpush1.bf16.msra.mxu1 %v658_v17  ;;  %v1498_v15 = vld [vmem:[%s1963_s2 + $0x20] sm:$0xf] }
  0xbb   :  { %695 = vmatprep.mubr.bf16.mxu0 %v1635_v4  ;;  %736 = vmatprep.mubr.bf16.mxu1 %v1635_v4  ;;  %v1058_v47 = vpop.permute.xlu0 %1057  ;;  %v1060_v48 = vpop.permute.xlu1 %1059  ;;  %v1233_v20 = vrot.slane %v1498_v15, %v1738_v9  ;;  %v1100_v24 = vpack.c.bf16 %v1094_v18, %v1094_v18  ;;  %v1229_v30 = vrot.slane %v1498_v15, %v1734_v7  ;;  %v1402_v18 = vld [vmem:[%s1965_s4] sm:$0xf]  ;;  %s1643_s4 = smov [#allocation5]  }
  0xbc   :  { %1482 = vmatprep.subr.msk.bf16.mxu0 %vm144_vm2, %v797_v19  ;;  %1484 = vmatprep.subr.msk.bf16.mxu1 %vm144_vm2, %v799_v21  ;;  %v1063_v53 = vsel %vm1061_vm8, %v1056_v36, %v1058_v47  ;;  %v1070_v54 = vsel %vm1061_vm8, %v1060_v48, %v1054_v35  ;;  %v1064_v13 = vsel %vm1061_vm8, %v1058_v47, %v1060_v48  ;;  %s1444_s21 = sshll.u32 %s1643_s4, 4  ;;  %s1445_s21 = int_to_ptr.vmem [resolvable:$true] %s1444_s21 }
  0xbd   :  { %v1095_v57 = vmul.f32 %v1081_v51, %v1063_v53  ;;  %v1097_v58 = vmul.f32 %v1089_v52, %v1070_v54  ;;  %v1096_v19 = vmul.f32 %v1085_v6, %v1064_v13  ;;  %v1241_v21 = vrot.slane %v1498_v15, %v1740_v10  ;;  %s1607_s22 = scalar_lea.vmem %s1445_s21, 256  ;;  %p1612_p9 = scmp.lt.s32.totalorder %s1445_s21, %s1445_s21 }
  0xbe   :  { %v1108_v29 = vsel %vm144_vm2, %v1100_v24, 0  ;;  %v1237_v10 = vrot.slane %v1498_v15, %v1736_v8  ;;  %p1608_p8 = scmp.ne.s32.totalorder %s1445_s21, %s1607_s22  ;;  %p1613_p10 = scmp.lt.s32.totalorder %s1607_s22, %s1607_s22 }
  0xbf   :  { %v1206_v59 = vpop.permute.xlu0 %1205  ;;  %v1208_v60 = vpop.permute.xlu1 %1207  ;;  %v1101_v12 = vpack.c.bf16 %v1095_v57, %v1095_v57  ;;  %v1103_v14 = vpack.c.bf16 %v1097_v58, %v1097_v58  ;;  %v1102_v25 = vpack.c.bf16 %v1096_v19, %v1096_v19 }
  0xc0   :  { %v1214_v31 = vsel %vm1213_vm9, %v1206_v59, %v1208_v60  ;;  %p1614_p11 = por %p1613_p10, %p1612_p9 }
  0xc1   :  { %v1114_v9 = vsel %vm144_vm2, %v1102_v25, 0  ;;  %v1246_v35 = vmul.f32 %v1229_v30, %v1214_v31 }
  0xc2   :  { %p1615_p12 = pnand %p1614_p11, %p1608_p8 }
  0xc3   :  { %v1210_v16 = vpop.permute.xlu0 %1209  ;;  %v1212_v17 = vpop.permute.xlu1 %1211  ;;  %v1252_v7 = vpack.c.bf16 %v1246_v35, %v1246_v35 }
  0xc4   :  { %v1215_v22 = vsel %vm1213_vm9, %v1208_v60, %v1210_v16  ;;  %v1222_v23 = vsel %vm1213_vm9, %v1212_v17, %v1206_v59  ;;  %v1216_v33 = vsel %vm1213_vm9, %v1210_v16, %v1212_v17 }
  0xc5   :  { %1477 = vmatmul.mubr.msk.bf16.vlgmr.msra.gmra.mrb[0].mxu0 %vm140_vm3, %v1475_v37  ;;  %1479 = vmatmul.mubr.msk.bf16.vlgmr.msra.gmra.mrb[0].mxu1 %vm140_vm3, %v1475_v37  ;;  %v1247_v26 = vmul.f32 %v1233_v20, %v1215_v22  ;;  %v1249_v27 = vmul.f32 %v1241_v21, %v1222_v23  ;;  %v1248_v36 = vmul.f32 %v1237_v10, %v1216_v33  ;;  %v1493_v37 = vld [vmem:[%s1962_s1 + $0xe] sm:$0x3] }
  0xc6   :  { %816 = vmatpush1.bf16.msra.mxu0 %v804_v38  ;;  %857 = vmatpush1.bf16.msra.mxu1 %v810_v40  ;;  %v1260_v38 = vsel %vm144_vm2, %v1252_v7, 0  ;;  %v1499_v40 = vld [vmem:[%s1962_s1 + $0x10] sm:$0x3] }
  0xc7   :  { %847 = vmatprep.mubr.bf16.mxu0 %v1635_v4  ;;  %888 = vmatprep.mubr.bf16.mxu1 %v1635_v4  ;;  %v1253_v32 = vpack.c.bf16 %v1247_v26, %v1247_v26  ;;  %v1255_v34 = vpack.c.bf16 %v1249_v27, %v1249_v27  ;;  %v1254_v8 = vpack.c.bf16 %v1248_v36, %v1248_v36 }
  0xc8   :  { %1488 = vmatprep.subr.msk.bf16.mxu0 %vm144_vm2, %v949_v43  ;;  %1490 = vmatprep.subr.msk.bf16.mxu1 %vm144_vm2, %v951_v45 }
  0xc9   :  { %v1266_v39 = vsel %vm144_vm2, %v1254_v8, 0 }
  0xd1   :  { %1483 = vmatmul.mubr.msk.bf16.vlgmr.msra.gmra.mrb[0].mxu0 %vm140_vm3, %v1481_v61  ;;  %1485 = vmatmul.mubr.msk.bf16.vlgmr.msra.gmra.mrb[0].mxu1 %vm140_vm3, %v1481_v61 }
  0xd2   :  { %968 = vmatpush1.bf16.msra.mxu0 %v956_v62  ;;  %1009 = vmatpush1.bf16.msra.mxu1 %v962_v5 }
  0xd3   :  { %999 = vmatprep.mubr.bf16.mxu0 %v1635_v4  ;;  %1040 = vmatprep.mubr.bf16.mxu1 %v1635_v4 }
  0xd4   :  { %1494 = vmatprep.subr.msk.bf16.mxu0 %vm144_vm2, %v1101_v12  ;;  %1496 = vmatprep.subr.msk.bf16.mxu1 %vm144_vm2, %v1103_v14 }
  0xdd   :  { %1489 = vmatmul.mubr.msk.bf16.vlgmr.msra.gmra.mrb[0].mxu0 %vm140_vm3, %v1487_v28  ;;  %1491 = vmatmul.mubr.msk.bf16.vlgmr.msra.gmra.mrb[0].mxu1 %vm140_vm3, %v1487_v28 }
  0xde   :  { %1120 = vmatpush1.bf16.msra.mxu0 %v1108_v29  ;;  %1161 = vmatpush1.bf16.msra.mxu1 %v1114_v9 }
  0xdf   :  { %1151 = vmatprep.mubr.bf16.mxu0 %v1635_v4  ;;  %1192 = vmatprep.mubr.bf16.mxu1 %v1635_v4 }
  0xe0   :  { %1500 = vmatprep.subr.msk.bf16.mxu0 %vm144_vm2, %v1253_v32  ;;  %1502 = vmatprep.subr.msk.bf16.mxu1 %vm144_vm2, %v1255_v34 }
  0xe9   :  { %1495 = vmatmul.mubr.msk.bf16.vlgmr.msra.gmra.mrb[0].mxu0 %vm140_vm3, %v1493_v37  ;;  %1497 = vmatmul.mubr.msk.bf16.vlgmr.msra.gmra.mrb[0].mxu1 %vm140_vm3, %v1493_v37 }
  0xea   :  { %1272 = vmatpush1.bf16.msra.mxu0 %v1260_v38  ;;  %1313 = vmatpush1.bf16.msra.mxu1 %v1266_v39 }
  0xeb   :  { %1303 = vmatprep.mubr.bf16.mxu0 %v1635_v4  ;;  %1344 = vmatprep.mubr.bf16.mxu1 %v1635_v4 }
  0xf5   :  { %1501 = vmatmul.mubr.msk.bf16.vlgmr.msra.gmra.mrb[0].mxu0 %vm140_vm3, %v1499_v40  ;;  %1503 = vmatmul.mubr.msk.bf16.vlgmr.msra.gmra.mrb[0].mxu1 %vm140_vm3, %v1499_v40 }
 0x1c8   :  { %v1305_v41 = vpop.f32.mrb[0].mxu0  ;;  %v1346_v42 = vpop.f32.mrb[0].mxu1 }
 0x1c9   :  { %v1358_v43 = vsel %vm1357_vm10, %v1305_v41, 0.0  ;;  %v1307_v44 = vpop.f32.mrb[1].mxu0  ;;  %v1348_v45 = vpop.f32.mrb[1].mxu1  ;;  %v1361_v51 = vsel %vm1357_vm10, %v1346_v42, 0.0 }
 0x1ca   :  { %v1359_v46 = vsel %vm1357_vm10, %v1307_v44, 0.0  ;;  %v1309_v47 = vpop.f32.mrb[2].mxu0  ;;  %v1350_v48 = vpop.f32.mrb[2].mxu1  ;;  %v1363_v53 = vsel %vm1357_vm10, %v1348_v45, 0.0 }
 0x1cb   :  { %v1360_v4 = vadd.f32 %v1359_v46, %v1358_v43  ;;  %v1310_v49 = vpop.f32.mrb[3].mxu0  ;;  %v1351_v50 = vpop.f32.mrb[3].mxu1 }
 0x1cd   :  { %v1362_v52 = vadd.f32 %v1361_v51, %v1360_v4 }
 0x1cf   :  { %v1364_v54 = vadd.f32 %v1363_v53, %v1362_v52 }
 0x1d1   :  { %1365 = vadd.xlane.f32.xlu0 %v1364_v54 }
 0x1e7   :  { %1395 = vperm.xlu0 %1579, %v1392_v55  }
 0x25e   :  { %v1366_v56 = vpop.xlane.xlu0 %1365 }
 0x25f   :  { %v1367_v57 = vmul.f32 0.001953125, %v1366_v56 }
 0x261   :  { %v1368_v58 = vsub.f32 %v1305_v41, %v1367_v57  ;;  %v1369_v59 = vsub.f32 %v1307_v44, %v1367_v57  ;;  %v1370_v60 = vsub.f32 %v1346_v42, %v1367_v57  ;;  %v1371_v61 = vsub.f32 %v1348_v45, %v1367_v57 }
 0x263   :  { %v1372_v62 = vmul.f32 %v1368_v58, %v1368_v58  ;;  %v1373_v63 = vmul.f32 %v1369_v59, %v1369_v59  ;;  %v1374_v5 = vmul.f32 %v1370_v60, %v1370_v60  ;;  %v1375_v6 = vmul.f32 %v1371_v61, %v1371_v61 }
 0x265   :  { %v1376_v11 = vsel %vm1357_vm10, %v1372_v62, 0.0  ;;  %v1377_v12 = vsel %vm1357_vm10, %v1373_v63, 0.0  ;;  %v1379_v14 = vsel %vm1357_vm10, %v1374_v5, 0.0  ;;  %v1381_v16 = vsel %vm1357_vm10, %v1375_v6, 0.0 }
 0x266   :  { %v1378_v13 = vadd.f32 %v1377_v12, %v1376_v11  ;;  %v1396_v23 = vpop.permute.xlu0 %1395 }
 0x268   :  { %v1380_v15 = vadd.f32 %v1379_v14, %v1378_v13 }
 0x26a   :  { %v1382_v17 = vadd.f32 %v1381_v16, %v1380_v15 }
 0x26c   :  { %1383 = vadd.xlane.f32.xlu1 %v1382_v17 }
 0x27d   :  { %1405 = vperm.xlu1 %1580, %v1402_v18  }
 0x2f9   :  { %v1384_v19 = vpop.xlane.xlu1 %1383 }
 0x2fa   :  { %v1385_v20 = vmul.f32 0.001953125, %v1384_v19 }
 0x2fc   :  { %v1386_v21 = vadd.f32 1e-05, %v1385_v20 }
 0x2fd   :  { %v1406_v28 = vpop.permute.xlu1 %1405 }
 0x2fe   :  { %1583 = vrsqrt.f32 %v1386_v21 }
 0x308   :  { %v1584_v22 = vpop.eup %1583 }
 0x309   :  { %v1388_v24 = vmul.f32 %v1584_v22, %v1368_v58  ;;  %v1389_v25 = vmul.f32 %v1584_v22, %v1369_v59  ;;  %v1390_v26 = vmul.f32 %v1584_v22, %v1370_v60  ;;  %v1391_v27 = vmul.f32 %v1584_v22, %v1371_v61 }
 0x30b   :  { %v1398_v29 = vmul.f32 %v1396_v23, %v1388_v24  ;;  %v1399_v30 = vmul.f32 %v1396_v23, %v1389_v25  ;;  %v1400_v9 = vmul.f32 %v1396_v23, %v1390_v26  ;;  %v1401_v10 = vmul.f32 %v1396_v23, %v1391_v27 }
 0x30d   :  { %v1408_v31 = vadd.f32 %v1406_v28, %v1398_v29  ;;  %v1409_v32 = vadd.f32 %v1406_v28, %v1399_v30  ;;  %v1410_v33 = vadd.f32 %v1406_v28, %v1400_v9  ;;  %v1411_v34 = vadd.f32 %v1406_v28, %v1401_v10 }
 0x30f   :  { %vm1412_vm11 = vcmp.gt.f32.partialorder %v1408_v31, 0.0  ;;  %vm1413_vm12 = vcmp.gt.f32.partialorder %v1409_v32, 0.0  ;;  %vm1414_vm13 = vcmp.gt.f32.partialorder %v1410_v33, 0.0  ;;  %vm1415_vm14 = vcmp.gt.f32.partialorder %v1411_v34, 0.0 }
 0x310   :  { %v1416_v35 = vmul.f32 0.01, %v1408_v31  ;;  %v1417_v36 = vmul.f32 0.01, %v1409_v32  ;;  %v1418_v7 = vmul.f32 0.01, %v1410_v33 }
 0x311   :  { %v1419_v8 = vmul.f32 0.01, %v1411_v34 }
 0x312   :  { %v1420_v37 = vsel %vm1412_vm11, %v1408_v31, %v1416_v35  ;;  %v1421_v38 = vsel %vm1413_vm12, %v1409_v32, %v1417_v36  ;;  %v1422_v39 = vsel %vm1414_vm13, %v1410_v33, %v1418_v7 }
 0x313   :  { %v1423_v40 = vsel %vm1415_vm14, %v1411_v34, %v1419_v8  ;;  %v1424_v41 = vadd.f32 %v1420_v37, %v1688_v1  ;;  %v1425_v42 = vadd.f32 %v1421_v38, %v1696_v3  ;;  %v1426_v43 = vadd.f32 %v1422_v39, %v1686_v0 }
 0x314   :  { %v1427_v44 = vadd.f32 %v1423_v40, %v1692_v2 }
 0x315   :  { %v1432_v45 = vcombine.low %v1424_v41, %v1425_v42 }
 0x316   :  { %v1433_v46 = vcombine.low %v1426_v43, %v1427_v44 }
 0x317   :  { %1436 = vst [vmem:[#allocation5] sm:$0xff] %v1432_v45 }
 0x318   :  { %1437 = vst [vmem:[#allocation5 + $0x8] sm:$0xff] %v1433_v46 }
 0x319   :  { %1618 = shalt.err (!%p1615_p12)
}
 0x31a   :  { %s1619_s25 = scalar_lea.hbm %s1966_s5, 256 }
 0x31b   :  { %p1620_p13 = scmp.ne.s32.totalorder %s1966_s5, %s1619_s25  ;;  %p1623_p0 = scmp.lt.u32.totalorder %s1619_s25, %s1966_s5 }
 0x31d   :  { %p1625_p1 = pnand %p1623_p0, %p1620_p13 }
 0x31f   :  { %1628 = shalt.err (!%p1625_p1)
}
 0x320   :  { %1447 = dma.vmem_to_hbm [thread:$0]  %s1445_s21, 256, %s1966_s5, [#allocation4]  }
 0x321   :  { %1631 = dma.done.wait [#allocation4], 256  }
 0x322   :  { %1632 = vsyncadd [#allocation4], 4294967040 }
 0x323   :  { %1451 = vsyncpa [#allocation3], 1 }
 0x324   :  { %1452 = vsyncpa [#allocation4], 1 }

</bundles_post_ra>
